<compile_context>
chip_gen: v7x
topology: tpu7x:2x2x1
jax: 0.10.0
libtpu: 0.0.40
codegen_flags: <defaults>
</compile_context>

<pallas_src>
import jax
import jax.numpy as jnp
from jax.experimental import pallas as pl
from jax.experimental.pallas import tpu as pltpu

IN_FEATURES = 28 * 28
NUM_CLASSES = 10


def _round_up(x, m):
    return (x + m - 1) // m * m


def logreg_kernel(x_ref, w_ref, b_ref, o_ref):
    # x_ref: (TB, 784) f32, w_ref: (784, 10) bf16, b_ref: (1, 10) f32
    # In-kernel bf16 cast of x: HBM sees a single f32 read, MXU runs bf16.
    logits = jnp.dot(x_ref[...].astype(jnp.bfloat16), w_ref[...],
                     preferred_element_type=jnp.float32)      # MXU, f32 acc
    logits = logits + b_ref[...]                              # (TB, 10) f32

    # Stable log-softmax == log(exp(z)/sum(exp(z))) of the torch code.
    m = jnp.max(logits, axis=-1, keepdims=True)
    z = logits - m
    o_ref[...] = z - jnp.log(jnp.sum(jnp.exp(z), axis=-1, keepdims=True))


def logreg_forward(x_nchw, w, b):
    """x_nchw: (B, 1, 28, 28) f32; w: (784, 10) f32; b: (10,) f32 -> (B, 10) f32."""
    B = x_nchw.shape[0]
    x_flat = x_nchw.reshape(B, -1)        # glue: flatten (view); keep caller dtype

    # Batch tile: multiple of 16 (sublane packing), up to 2048 rows of f32 x
    # (~7 MiB lane-padded per buffer, double-buffered). For larger batches,
    # split into >=2 grid steps so v7x megacore can shard the batch axis.
    TB = _round_up(max(B, 1), 16)
    if B >= 512:
        TB = min(TB, _round_up((B + 1) // 2, 16))
    TB = min(TB, 2048)

    grid = (pl.cdiv(B, TB),)              # ragged tail handled by masked stores

    w_bf16 = w.astype(jnp.bfloat16)       # tiny (784x10); negligible traffic
    b2 = b.reshape(1, NUM_CLASSES).astype(jnp.float32)

    out = pl.pallas_call(
        logreg_kernel,
        out_shape=jax.ShapeDtypeStruct((B, NUM_CLASSES), jnp.float32),
        grid=grid,
        in_specs=[
            pl.BlockSpec((TB, IN_FEATURES), lambda i: (i, 0)),            # tiled x
            pl.BlockSpec((IN_FEATURES, NUM_CLASSES), lambda i: (0, 0)),   # resident W
            pl.BlockSpec((1, NUM_CLASSES), lambda i: (0, 0)),             # resident b
        ],
        out_specs=pl.BlockSpec((TB, NUM_CLASSES), lambda i: (i, 0)),
        compiler_params=pltpu.CompilerParams(
            dimension_semantics=("parallel",),   # v7x: shard batch over both TCs
            vmem_limit_bytes=48 << 20,           # covers TB=2048 f32 x on v5e too
        ),
    )(x_flat, w_bf16, b2)

    return out


def init_params(key):
    """Deterministic init matching get_weights: randn(dims) / dims[0]."""
    k_w, k_b = jax.random.split(key)
    w = jax.random.normal(k_w, (IN_FEATURES, NUM_CLASSES), jnp.float32) / IN_FEATURES
    b = jax.random.normal(k_b, (NUM_CLASSES,), jnp.float32) / NUM_CLASSES
    return w, b


if __name__ == "__main__":
    key = jax.random.PRNGKey(0)
    k_x, k_p = jax.random.split(key)

    # Small batch of MNIST-shaped inputs (NCHW).
    B = 2
    x = jax.random.normal(k_x, (B, 1, 28, 28), jnp.float32)
    w, b = init_params(k_p)

    out = logreg_forward(x, w, b)
    out = jax.block_until_ready(out)
    assert out.shape == (B, NUM_CLASSES)
    assert bool(jnp.all(jnp.isfinite(out)))

    x_flat = x.reshape(B, -1)

    # Reference 1: same bf16 matmul precision as the kernel (tight tolerance).
    logits_bf = jnp.dot(x_flat.astype(jnp.bfloat16), w.astype(jnp.bfloat16),
                        preferred_element_type=jnp.float32) + b
    ref_bf = logits_bf - jax.scipy.special.logsumexp(logits_bf, axis=1, keepdims=True)
    assert jnp.allclose(out, ref_bf, atol=1e-4, rtol=1e-4), "mismatch vs bf16 reference"

    # Reference 2: full-f32 torch formula (loose tolerance covers the bf16 cast).
    logits_f32 = x_flat @ w + b
    ref_f32 = jnp.log(jnp.exp(logits_f32) / jnp.exp(logits_f32).sum(axis=1, keepdims=True))
    assert jnp.allclose(out, ref_f32, atol=5e-2, rtol=5e-2), "mismatch vs f32 reference"

    print("KERNEL_OK")
</pallas_src>

<mosaic_0001>
module attributes {stable_mosaic.version = 11 : i64} {
  func.func @logreg_kernel(%arg0: i32, %arg1: memref<16x784xf32, #tpu.memory_space<vmem>>, %arg2: memref<784x10xbf16, #tpu.memory_space<vmem>>, %arg3: memref<1x10xf32, #tpu.memory_space<vmem>>, %arg4: memref<16x10xf32, #tpu.memory_space<vmem>>) attributes {dimension_semantics = [#tpu.dimension_semantics<parallel>], iteration_bounds = array<i64: 1>, scalar_prefetch = 0 : i64, scratch_operands = 0 : i64, tpu.core_type = #tpu.core_type<tc>, window_params = [{transform_indices = @transform_0, window_bounds = array<i64: 16, 784>}, {pipeline_mode = #tpu.pipeline_mode<synchronous>, transform_indices = @transform_1, window_bounds = array<i64: 784, 10>}, {pipeline_mode = #tpu.pipeline_mode<synchronous>, transform_indices = @transform_2, window_bounds = array<i64: 1, 10>}, {transform_indices = @transform_3, window_bounds = array<i64: 16, 10>}]} {
    %c0 = arith.constant 0 : index
    %c0_0 = arith.constant 0 : index
    %0 = vector.load %arg1[%c0, %c0_0] : memref<16x784xf32, #tpu.memory_space<vmem>>, vector<16x784xf32>
    %1 = arith.truncf %0 : vector<16x784xf32> to vector<16x784xbf16>
    %c0_1 = arith.constant 0 : index
    %c0_2 = arith.constant 0 : index
    %2 = vector.load %arg2[%c0_1, %c0_2] : memref<784x10xbf16, #tpu.memory_space<vmem>>, vector<784x10xbf16>
    %cst = arith.constant dense<0.000000e+00> : vector<16x10xf32>
    %3 = tpu.matmul %1, %2, %cst {dimension_numbers = #tpu.dot_dimension_numbers<[1], [0], [0], [1], [0, 0, 1, 1], [], []>} : vector<16x784xbf16>, vector<784x10xbf16>, vector<16x10xf32> -> vector<16x10xf32>
    %c0_3 = arith.constant 0 : index
    %c0_4 = arith.constant 0 : index
    %4 = vector.load %arg3[%c0_3, %c0_4] : memref<1x10xf32, #tpu.memory_space<vmem>>, vector<1x10xf32>
    %5 = vector.broadcast %4 : vector<1x10xf32> to vector<16x10xf32>
    %6 = arith.addf %3, %5 : vector<16x10xf32>
    %cst_5 = arith.constant dense<0xFF800000> : vector<16xf32>
    %7 = vector.multi_reduction <maximumf>, %6, %cst_5 [1] : vector<16x10xf32> to vector<16xf32>
    %8 = vector.shape_cast %7 : vector<16xf32> to vector<16x1xf32>
    %9 = vector.broadcast %8 : vector<16x1xf32> to vector<16x10xf32>
    %10 = arith.subf %6, %9 : vector<16x10xf32>
    %11 = math.exp %10 : vector<16x10xf32>
    %cst_6 = arith.constant dense<0.000000e+00> : vector<16xf32>
    %12 = vector.multi_reduction <add>, %11, %cst_6 [1] : vector<16x10xf32> to vector<16xf32>
    %13 = vector.shape_cast %12 : vector<16xf32> to vector<16x1xf32>
    %14 = math.log %13 : vector<16x1xf32>
    %15 = vector.broadcast %14 : vector<16x1xf32> to vector<16x10xf32>
    %16 = arith.subf %10, %15 : vector<16x10xf32>
    %c0_7 = arith.constant 0 : index
    %c0_8 = arith.constant 0 : index
    %17 = vector.load %arg4[%c0_7, %c0_8] : memref<16x10xf32, #tpu.memory_space<vmem>>, vector<16x10xf32>
    tpu.vector_store %arg4[%c0_7, %c0_8], %16 {strides = array<i32>} : memref<16x10xf32, #tpu.memory_space<vmem>>, vector<16x10xf32>,
    return
  }
  func.func @transform_0(%arg0: i32) -> (i32, i32) {
    %c0_i32 = arith.constant 0 : i32
    %c0_i32_0 = arith.constant 0 : i32
    return %arg0, %c0_i32 : i32, i32
  }
  func.func @transform_1(%arg0: i32) -> (i32, i32) {
    %c0_i32 = arith.constant 0 : i32
    %c0_i32_0 = arith.constant 0 : i32
    %c0_i32_1 = arith.constant 0 : i32
    return %c0_i32, %c0_i32_0 : i32, i32
  }
  func.func @transform_2(%arg0: i32) -> (i32, i32) {
    %c0_i32 = arith.constant 0 : i32
    %c0_i32_0 = arith.constant 0 : i32
    %c0_i32_1 = arith.constant 0 : i32
    return %c0_i32, %c0_i32_0 : i32, i32
  }
  func.func @transform_3(%arg0: i32) -> (i32, i32) {
    %c0_i32 = arith.constant 0 : i32
    %c0_i32_0 = arith.constant 0 : i32
    return %arg0, %c0_i32 : i32, i32
  }
}

</mosaic_0001>

<bundles_post_ra>
// kernel: tpu_custom_call.1
= control target key start
LH: loop header
LB: loop body
LE: loop exit
PB: predicated region body
PF: predicated region fallthrough
CT: control target
= control target key end

     0   :  { %8 = vsyncpa [#allocation3], 0  ;;  %v55_v28 = vlaneseq  ;;  %v1057_v32 = vmov 1983009808   ;;  %v1058_v53 = vmov 0.0   ;;  %vm1059_vm0 = vmmov 0   ;;  %s1317_s0 = inlined_call_operand.vmem [shape: f32[2,784], index: 0, kind: input, shape index: {}]   ;;  %s1318_s1 = inlined_call_operand.vmem [shape: bf16[784,10], index: 1, kind: input, shape index: {}]   ;;  %s1319_s2 = inlined_call_operand.vmem [shape: f32[1,10], index: 2, kind: input, shape index: {}]   ;;  %s1320_s3 = inlined_call_operand.hbm [shape: f32[2,10], index: 3, kind: output, shape index: {}]  }
   0x1   :  { %v952_v0 = vld [vmem:[%s1318_s1 + $0x40] sm:$0xff]   ;;  %v956_v4 = vld [vmem:[%s1318_s1 + $0x48] sm:$0xff]   ;;  %v960_v8 = vld [vmem:[%s1318_s1 + $0x50] sm:$0xff]   ;;  %v53_v33 = vunpack.c.l.s4 %v1057_v32  ;;  %vm610_vm1 = vcmask 130048   ;;  %vm778_vm2 = vcmask 80896  }
   0x2   :  { %v953_v1 = vld [vmem:[%s1318_s1] sm:$0xff]   ;;  %872 = vmatprep.subr.bf16.mxu0 %v952_v0  ;;  %v957_v5 = vld [vmem:[%s1318_s1 + $0x8] sm:$0xff]   ;;  %v961_v9 = vld [vmem:[%s1318_s1 + $0x10] sm:$0xff]   ;;  %v56_v34 = vshrl.u32 %v55_v28, 7 }
   0x3   :  { %v954_v2 = vld [vmem:[%s1318_s1 + $0xc0] sm:$0xff]   ;;  %873 = vmatpush3.bf16.msra.mxu0 %v953_v1  ;;  %v958_v6 = vld [vmem:[%s1318_s1 + $0xc8] sm:$0xff]   ;;  %v962_v10 = vld [vmem:[%s1318_s1 + $0xd0] sm:$0xff]   ;;  %v54_v37 = vunpack.c.0.s8 %v53_v33 }
   0x4   :  { %v955_v3 = vld [vmem:[%s1318_s1 + $0x80] sm:$0xff]   ;;  %894 = vmatprep.subr.bf16.mxu1 %v954_v2  ;;  %874 = vmatprep.subr.bf16.mxu0 %v956_v4  ;;  %v959_v7 = vld [vmem:[%s1318_s1 + $0x88] sm:$0xff]   ;;  %v963_v11 = vld [vmem:[%s1318_s1 + $0x90] sm:$0xff]  }
   0x5   :  { %895 = vmatpush3.bf16.msra.mxu1 %v955_v3  ;;  %v964_v12 = vld [vmem:[%s1318_s1 + $0x58] sm:$0xff]   ;;  %v968_v16 = vld [vmem:[%s1318_s1 + $0x60] sm:$0xff]   ;;  %v972_v20 = vld [vmem:[%s1318_s1 + $0x68] sm:$0xff]   ;;  %v1188_v40 = vsub.s32 %v54_v37, %v56_v34 }
   0x6   :  { %896 = vmatprep.subr.bf16.mxu1 %v958_v6  ;;  %v965_v13 = vld [vmem:[%s1318_s1 + $0x18] sm:$0xff]   ;;  %v969_v17 = vld [vmem:[%s1318_s1 + $0x20] sm:$0xff]   ;;  %v973_v21 = vld [vmem:[%s1318_s1 + $0x28] sm:$0xff]  }
   0x7   :  { %875 = vmatpush3.bf16.msra.mxu0 %v957_v5  ;;  %v966_v14 = vld [vmem:[%s1318_s1 + $0xd8] sm:$0xff]   ;;  %v970_v18 = vld [vmem:[%s1318_s1 + $0xe0] sm:$0xff]   ;;  %v974_v22 = vld [vmem:[%s1318_s1 + $0xe8] sm:$0xff]  }
   0x8   :  { %876 = vmatprep.subr.bf16.mxu0 %v960_v8  ;;  %v967_v15 = vld [vmem:[%s1318_s1 + $0x98] sm:$0xff]   ;;  %v971_v19 = vld [vmem:[%s1318_s1 + $0xa0] sm:$0xff]   ;;  %v975_v23 = vld [vmem:[%s1318_s1 + $0xa8] sm:$0xff]  }
   0x9   :  { %897 = vmatpush3.bf16.msra.mxu1 %v959_v7  ;;  %v976_v24 = vld [vmem:[%s1318_s1 + $0x70] sm:$0xff]   ;;  %v980_v29 = vld [vmem:[%s1318_s1 + $0x78] sm:$0xff]   ;;  %v992_v42 = vld [vmem:[%s1318_s1 + $0x140] sm:$0xff]  }
   0xa   :  { %898 = vmatprep.subr.bf16.mxu1 %v962_v10  ;;  %v977_v25 = vld [vmem:[%s1318_s1 + $0x30] sm:$0xff]   ;;  %v981_v30 = vld [vmem:[%s1318_s1 + $0x38] sm:$0xff]   ;;  %v997_v0 = vld [vmem:[%s1318_s1 + $0x100] sm:$0xff]  }
   0xb   :  { %877 = vmatpush3.bf16.msra.mxu0 %v961_v9  ;;  %v978_v26 = vld [vmem:[%s1318_s1 + $0xf0] sm:$0xff]   ;;  %v982_v31 = vld [vmem:[%s1318_s1 + $0xf8] sm:$0xff]   ;;  %v998_v3 = vld [vmem:[%s1318_s1 + $0x148] sm:$0xff]  }
   0xc   :  { %878 = vmatprep.subr.bf16.mxu0 %v964_v12  ;;  %v979_v27 = vld [vmem:[%s1318_s1 + $0xb0] sm:$0xff]   ;;  %v985_v36 = vld [vmem:[%s1317_s0 + $0x1c] ss:$14 sps:$4 sm:$0xff]   ;;  %v987_v38 = vld [vmem:[%s1317_s0 + $0x38] ss:$14 sps:$4 sm:$0xff]  }
   0xd   :  { %899 = vmatpush3.bf16.msra.mxu1 %v963_v11  ;;  %v983_v35 = vld [vmem:[%s1317_s0] ss:$14 sps:$4 sm:$0xff]   ;;  %v991_v41 = vld [vmem:[%s1318_s1 + $0xb8] sm:$0xff]   ;;  %v993_v43 = vld [vmem:[%s1317_s0 + $0x4] ss:$14 sps:$4 sm:$0xff]   ;;  %v72_v46 = vrot.slane %v985_v36, %v1188_v40  ;;  %v129_v47 = vrot.slane %v987_v38, %v1188_v40 }
   0xe   :  { %900 = vmatprep.subr.bf16.mxu1 %v966_v14  ;;  %v989_v39 = vld [vmem:[%s1317_s0 + $0x54] ss:$14 sps:$4 sm:$0xff]   ;;  %v58_v45 = vrot.slane %v983_v35, %v1188_v40  ;;  %v995_v49 = vld [vmem:[%s1317_s0 + $0x3c] ss:$14 sps:$4 sm:$0xff]   ;;  %v996_v50 = vld [vmem:[%s1317_s0 + $0x58] ss:$14 sps:$4 sm:$0xff]   ;;  %v65_v51 = vrot.slane %v993_v43, %v1188_v40 }
   0xf   :  { %879 = vmatpush3.bf16.msra.mxu0 %v965_v13  ;;  %v994_v44 = vld [vmem:[%s1317_s0 + $0x20] ss:$14 sps:$4 sm:$0xff]   ;;  %v143_v48 = vrot.slane %v989_v39, %v1188_v40  ;;  %v136_v59 = vrot.slane %v995_v49, %v1188_v40  ;;  %v150_v60 = vrot.slane %v996_v50, %v1188_v40  ;;  %v1002_v9 = vld [vmem:[%s1318_s1 + $0x158] sm:$0xff]  }
  0x10   :  { %880 = vmatprep.subr.bf16.mxu0 %v968_v16  ;;  %v79_v52 = vrot.slane %v994_v44, %v1188_v40  ;;  %v81_v54 = vcombine.high %v58_v45, %v72_v46  ;;  %v80_v56 = vcombine.low %v58_v45, %v72_v46  ;;  %v999_v6 = vld [vmem:[%s1318_s1 + $0x108] sm:$0xff]   ;;  %v1000_v7 = vld [vmem:[%s1318_s1 + $0x150] sm:$0xff]   ;;  %v1003_v10 = vld [vmem:[%s1318_s1 + $0x118] sm:$0xff]  }
  0x11   :  { %901 = vmatpush3.bf16.msra.mxu1 %v967_v15  ;;  %v152_v55 = vcombine.high %v129_v47, %v143_v48  ;;  %v151_v57 = vcombine.low %v129_v47, %v143_v48  ;;  %v154_v1 = vcombine.high %v136_v59, %v150_v60  ;;  %v153_v2 = vcombine.low %v136_v59, %v150_v60  ;;  %v1001_v8 = vld [vmem:[%s1318_s1 + $0x110] sm:$0xff]   ;;  %v1004_v11 = vld [vmem:[%s1318_s1 + $0x160] sm:$0xff]   ;;  %v1015_v16 = vld [vmem:[%s1317_s0 + $0xc] ss:$14 sps:$4 sm:$0x33]  }
  0x12   :  { %902 = vmatprep.subr.bf16.mxu1 %v970_v18  ;;  %v83_v58 = vcombine.high %v65_v51, %v79_v52  ;;  %v82_v61 = vcombine.low %v65_v51, %v79_v52  ;;  %v1012_v12 = vld [vmem:[%s1318_s1 + $0x180] sm:$0xff]   ;;  %v1013_v14 = vld [vmem:[%s1317_s0 + $0x8] ss:$14 sps:$4 sm:$0xff]  }
  0x13   :  { %881 = vmatpush3.bf16.msra.mxu0 %v969_v17  ;;  %v205_v62 = vpack.c.bf16 %v152_v55, %v81_v54  ;;  %v204_v63 = vpack.c.bf16 %v151_v57, %v80_v56  ;;  %v1005_v13 = vld [vmem:[%s1318_s1 + $0x120] sm:$0xff]   ;;  %v1018_v17 = vld [vmem:[%s1317_s0 + $0x28] ss:$14 sps:$4 sm:$0x33]   ;;  %v1011_v43 = vld [vmem:[%s1318_s1 + $0x138] sm:$0xff]  }
  0x14   :  { %882 = vmatprep.subr.bf16.mxu0 %v972_v20  ;;  %v207_v4 = vpack.c.bf16 %v154_v1, %v83_v58  ;;  %v206_v5 = vpack.c.bf16 %v153_v2, %v82_v61  ;;  %v1016_v15 = vld [vmem:[%s1317_s0 + $0x24] ss:$14 sps:$4 sm:$0xff]   ;;  %v1006_v18 = vld [vmem:[%s1318_s1 + $0x168] sm:$0xff]   ;;  %v821_v46 = vld [vmem:[%s1319_s2] ss:$0 sm:$0xff] }
  0x15   :  { %903 = vmatpush3.bf16.msra.mxu1 %v971_v19  ;;  %646 = vmatprep.mubr.bf16.mxu0 %v205_v62  ;;  %v94_v19 = vrot.slane %v1013_v14, %v1188_v40  ;;  %v108_v20 = vrot.slane %v1016_v15, %v1188_v40  ;;  %v1008_v34 = vld [vmem:[%s1318_s1 + $0x170] sm:$0xff]  }
  0x16   :  { %904 = vmatprep.subr.bf16.mxu1 %v974_v22  ;;  %687 = vmatprep.mubr.bf16.mxu1 %v207_v4  ;;  %v1021_v22 = vld [vmem:[%s1317_s0 + $0x44] ss:$14 sps:$4 sm:$0x33]  }
  0x17   :  { %883 = vmatpush3.bf16.msra.mxu0 %v973_v21  ;;  %v1019_v21 = vld [vmem:[%s1317_s0 + $0x40] ss:$14 sps:$4 sm:$0xff]   ;;  %v172_v28 = vrot.slane %v1021_v22, %v1188_v40 }
  0x18   :  { %884 = vmatprep.subr.bf16.mxu0 %v976_v24  ;;  %v115_v24 = vrot.slane %v1018_v17, %v1188_v40  ;;  %v1009_v37 = vld [vmem:[%s1318_s1 + $0x130] sm:$0xff]  }
  0x19   :  { %905 = vmatpush3.bf16.msra.mxu1 %v975_v23  ;;  %v101_v23 = vrot.slane %v1015_v16, %v1188_v40 }
  0x1a   :  { %906 = vmatprep.subr.bf16.mxu1 %v978_v26  ;;  %v1024_v26 = vld [vmem:[%s1317_s0 + $0x60] ss:$14 sps:$4 sm:$0x33]  }
  0x1b   :  { %885 = vmatpush3.bf16.msra.mxu0 %v977_v25  ;;  %v1022_v25 = vld [vmem:[%s1317_s0 + $0x5c] ss:$14 sps:$4 sm:$0xff]   ;;  %v186_v32 = vrot.slane %v1024_v26, %v1188_v40  ;;  %v118_v33 = vcombine.low %v101_v23, %v115_v24 }
  0x1c   :  { %886 = vmatprep.subr.bf16.mxu0 %v980_v29  ;;  %v1007_v29 = vld [vmem:[%s1318_s1 + $0x128] sm:$0xff]  }
  0x1d   :  { %907 = vmatpush3.bf16.msra.mxu1 %v979_v27  ;;  %v165_v27 = vrot.slane %v1019_v21, %v1188_v40  ;;  %v189_v36 = vcombine.low %v172_v28, %v186_v32 }
  0x1e   :  { %908 = vmatprep.subr.bf16.mxu1 %v982_v31  ;;  %v179_v31 = vrot.slane %v1022_v25, %v1188_v40  ;;  %v1010_v40 = vld [vmem:[%s1318_s1 + $0x178] sm:$0xff]  }
  0x1f   :  { %887 = vmatpush3.bf16.msra.mxu0 %v981_v30  ;;  %v117_v30 = vcombine.high %v94_v19, %v108_v20  ;;  %v210_v39 = vpack.c.bf16 %v189_v36, %v118_v33 }
  0x20   :  { %916 = vmatprep.subr.bf16.mxu0 %v992_v42  ;;  %v188_v35 = vcombine.high %v165_v27, %v179_v31  ;;  %v187_v42 = vcombine.low %v165_v27, %v179_v31 }
  0x21   :  { %909 = vmatpush3.bf16.msra.mxu1 %v991_v41  ;;  %v116_v41 = vcombine.low %v94_v19, %v108_v20 }
  0x22   :  { %940 = vmatprep.subr.bf16.mxu1 %v1058_v53  ;;  %647 = vmatmul.mubr.bf16.vlgmr.msra.gmra.mrb[0].mxu0 %v204_v63  ;;  %v209_v38 = vpack.c.bf16 %v188_v35, %v117_v30 }
  0x23   :  { %917 = vmatpush3.bf16.msra.mxu0 %v997_v0  ;;  %v208_v44 = vpack.c.bf16 %v187_v42, %v116_v41 }
  0x24   :  { %918 = vmatprep.subr.bf16.mxu0 %v998_v3  ;;  %688 = vmatmul.mubr.bf16.vlgmr.msra.gmra.mrb[0].mxu1 %v206_v5 }
  0x25   :  { %942 = vmatprep.mubr.msk.bf16.mxu1 %vm1059_vm0, %v1058_v53  ;;  %941 = vmatpush3.bf16.msra.mxu1 %v1012_v12 }
  0x26   :  { %728 = vmatprep.mubr.bf16.mxu0 %v209_v38 }
  0x27   :  { %919 = vmatpush3.bf16.msra.mxu0 %v999_v6 }
  0x28   :  { %920 = vmatprep.subr.bf16.mxu0 %v1000_v7 }
  0x2b   :  { %921 = vmatpush3.bf16.msra.mxu0 %v1001_v8 }
  0x2c   :  { %922 = vmatprep.subr.bf16.mxu0 %v1002_v9  ;;  %943 = vmatmul.mubr.msk.bf16.vlgmr.msra.gmra.mrb[4].mxu1 %vm610_vm1, %v210_v39 }
  0x2f   :  { %923 = vmatpush3.bf16.msra.mxu0 %v1003_v10 }
  0x30   :  { %924 = vmatprep.subr.bf16.mxu0 %v1004_v11 }
  0x33   :  { %925 = vmatpush3.bf16.msra.mxu0 %v1005_v13 }
  0x34   :  { %926 = vmatprep.subr.bf16.mxu0 %v1006_v18 }
  0x37   :  { %927 = vmatpush3.bf16.msra.mxu0 %v1007_v29 }
  0x38   :  { %928 = vmatprep.subr.bf16.mxu0 %v1008_v34 }
  0x3b   :  { %929 = vmatpush3.bf16.msra.mxu0 %v1009_v37 }
  0x3c   :  { %930 = vmatprep.subr.bf16.mxu0 %v1010_v40 }
  0x3f   :  { %931 = vmatpush3.bf16.msra.mxu0 %v1011_v43 }
  0x42   :  { %729 = vmatmul.mubr.bf16.vlgmr.msra.gmra.mrb[4].mxu0 %v208_v44 }
  0xf5   :  { %v888_v45 = vpop.f32.mrb[0].mxu0 }
  0xf6   :  { %v889_v47 = vpop.f32.mrb[1].mxu0 }
  0xf7   :  { %v890_v48 = vadd.f32 %v889_v47, %v888_v45  ;;  %v891_v49 = vpop.f32.mrb[2].mxu0  ;;  %v910_v50 = vpop.f32.mrb[0].mxu1 }
  0xf8   :  { %v892_v51 = vpop.f32.mrb[3].mxu0  ;;  %v911_v54 = vpop.f32.mrb[1].mxu1 }
  0xf9   :  { %v649_v52 = vadd.f32 %v890_v48, %v821_v46  ;;  %v893_v53 = vadd.f32 %v892_v51, %v891_v49  ;;  %v912_v55 = vadd.f32 %v911_v54, %v910_v50  ;;  %v913_v56 = vpop.f32.mrb[2].mxu1 }
  0xfa   :  { %v914_v58 = vpop.f32.mrb[3].mxu1 }
  0xfb   :  { %v652_v57 = vadd.f32 %v893_v53, %v821_v46  ;;  %v690_v59 = vadd.f32 %v912_v55, %v649_v52  ;;  %v915_v60 = vadd.f32 %v914_v58, %v913_v56 }
  0xfd   :  { %v693_v61 = vadd.f32 %v915_v60, %v652_v57 }
  0xff   :  { %v771_v62 = vpop.f32.mrb[4].mxu1 }
 0x100   :  { %v944_v63 = vpop.f32.mrb[5].mxu1 }
 0x101   :  { %v774_v0 = vpop.f32.mrb[6].mxu1 }
 0x102   :  { %v945_v1 = vpop.f32.mrb[7].mxu1 }
 0x115   :  { %v932_v2 = vpop.f32.mrb[4].mxu0 }
 0x116   :  { %v933_v3 = vpop.f32.mrb[5].mxu0 }
 0x117   :  { %v934_v4 = vadd.f32 %v933_v3, %v932_v2  ;;  %v935_v5 = vpop.f32.mrb[6].mxu0 }
 0x118   :  { %v936_v6 = vpop.f32.mrb[7].mxu0 }
 0x119   :  { %v731_v7 = vadd.f32 %v934_v4, %v690_v59  ;;  %v937_v8 = vadd.f32 %v936_v6, %v935_v5 }
 0x11b   :  { %v772_v9 = vadd.f32 %v771_v62, %v731_v7  ;;  %v734_v10 = vadd.f32 %v937_v8, %v693_v61 }
 0x11d   :  { %v775_v11 = vadd.f32 %v774_v0, %v734_v10  ;;  %v779_v12 = vsel %vm778_vm2, %v772_v9, -inf }
 0x11e   :  { %780 = vmax.xlane.f32.xlu0 %v779_v12 }
 0x11f   :  { %v782_v13 = vsel %vm778_vm2, %v775_v11, -inf }
 0x122   :  { %783 = vmax.xlane.f32.xlu0 %v782_v13 }
 0x1ab   :  { %v781_v14 = vpop.xlane.xlu0 %780 }
 0x1ac   :  { %v785_v15 = vsub.f32 %v772_v9, %v781_v14 }
 0x1ae   :  { %v787_v16 = vmul.f32 1.442695, %v785_v15 }
 0x1af   :  { %v784_v17 = vpop.xlane.xlu0 %783 }
 0x1b0   :  { %1025 = vpow2.f32 %v787_v16  ;;  %v786_v18 = vsub.f32 %v775_v11, %v784_v17 }
 0x1b2   :  { %v789_v19 = vmul.f32 1.442695, %v786_v18 }
 0x1b4   :  { %1027 = vpow2.f32 %v789_v19 }
 0x1ba   :  { %v1026_v20 = vpop.eup %1025 }
 0x1bb   :  { %v791_v21 = vsel %vm778_vm2, %v1026_v20, 0.0 }
 0x1bc   :  { %792 = vadd.xlane.f32.xlu1 %v791_v21 }
 0x1be   :  { %v1028_v22 = vpop.eup %1027 }
 0x1bf   :  { %v794_v23 = vsel %vm778_vm2, %v1028_v22, 0.0 }
 0x1c0   :  { %795 = vadd.xlane.f32.xlu1 %v794_v23 }
 0x249   :  { %v793_v24 = vpop.xlane.xlu1 %792 }
 0x24a   :  { %1029 = vlog2.f32 %v793_v24 }
 0x24d   :  { %v796_v25 = vpop.xlane.xlu1 %795 }
 0x24e   :  { %1031 = vlog2.f32 %v796_v25 }
 0x254   :  { %v1030_v26 = vpop.eup %1029 }
 0x255   :  { %v798_v27 = vmul.f32 0.6931472, %v1030_v26 }
 0x257   :  { %v801_v28 = vsub.f32 %v785_v15, %v798_v27 }
 0x258   :  { %v1032_v29 = vpop.eup %1031 }
 0x259   :  { %803 = vst.msk [vmem:[#allocation2] sm:$0xff] %vm778_vm2, %v801_v28  ;;  %v800_v30 = vmul.f32 0.6931472, %v1032_v29 }
 0x25b   :  { %v802_v31 = vsub.f32 %v786_v18, %v800_v30 }
 0x25d   :  { %804 = vst.msk [vmem:[#allocation2 + $0x8] sm:$0xff] %vm778_vm2, %v802_v31 }
 0x25e   :  { %809 = vsyncadd [#allocation3], 224  ;;  %s1060_s1 = smov [#allocation2]  }
 0x25f   :  { %s810_s2 = sshll.u32 %s1060_s1, 4  ;;  %s811_s2 = int_to_ptr.vmem [resolvable:$true] %s810_s2 }
 0x260   :  { %s1033_s8 = scalar_lea.vmem %s811_s2, 32  ;;  %s1037_s9 = scalar_lea.vmem %s811_s2, 256 }
 0x261   :  { %p1034_p0 = scmp.ne.s32.totalorder %s811_s2, %s1033_s8  ;;  %p1038_p1 = scmp.lt.s32.totalorder %s811_s2, %s811_s2 }
 0x262   :  { %p1039_p2 = scmp.lt.s32.totalorder %s1037_s9, %s1033_s8 }
 0x264   :  { %p1040_p3 = por %p1039_p2, %p1038_p1 }
 0x266   :  { %p1041_p4 = pnand %p1040_p3, %p1034_p0 }
 0x268   :  { %1044 = shalt.err (!%p1041_p4)
}
 0x269   :  { %s1045_s12 = scalar_lea.hbm %s1320_s3, 32 }
 0x26a   :  { %p1046_p5 = scmp.ne.s32.totalorder %s1320_s3, %s1045_s12  ;;  %p1049_p6 = scmp.lt.u32.totalorder %s1045_s12, %s1320_s3 }
 0x26c   :  { %p1051_p7 = pnand %p1049_p6, %p1046_p5 }
 0x26e   :  { %1054 = shalt.err (!%p1051_p7)
}
 0x26f   :  { %s1061_s17 = smov 32   ;;  %s1062_s18 = smov 2  }
 0x270   :  { %816 = dma.vmem_to_hbm [thread:$0]  %s811_s2, 32, %s1320_s3, [#allocation3], %s1061_s17, %s1061_s17, %s1062_s18  }
 0x271   :  { %1055 = dma.done.wait [#allocation3], 256  }
 0x272   :  { %1056 = vsyncadd [#allocation3], 4294967040 }
 0x273   :  { %820 = vsyncpa [#allocation3], 1 }

</bundles_post_ra>
